<compile_context>
chip_gen: v5e
topology: v5e:2x2
jax: 0.10.0
libtpu: 0.0.40
codegen_flags: <defaults>
</compile_context>

<pallas_src>
import functools

import jax
import jax.numpy as jnp
import numpy as np
from jax.experimental import pallas as pl
from jax.experimental.pallas import tpu as pltpu


def _round_up(x, m):
    return ((x + m - 1) // m) * m


def _pad_dim(x):
    # Size-aware padding policy: lane-dense 128 only once the dim is >= 128,
    # otherwise just round to the 8-sublane multiple (full-extent blocks).
    return _round_up(x, 128) if x >= 128 else _round_up(x, 8)


def _gat_lrp_kernel(h_ref, adj_ref, w_ref, wb_ref, wpb_ref, scol_ref, srow_ref,
                    kconst_ref, out_ref, attw_ref, *, alpha, xai_lambda,
                    num_heads):
    hd = pl.program_id(1)

    h = h_ref[0]                                   # (Np, Dp) f32
    adj = adj_ref[0]                               # (Np, Np) f32

    scale = 1.0 + xai_lambda
    scale2 = scale * scale
    inv_heads = 1.0 / num_heads

    # Single per-head MXU matmul, bf16 operands, f32 accumulation.
    hw_raw = jnp.dot(h.astype(jnp.bfloat16), w_ref[0],
                     preferred_element_type=jnp.float32)   # (Np, Dp) = h @ W^T
    hw = hw_raw + wb_ref[0]
    # Wp.weight = (1+lambda) * W.weight, independent bias -> no second matmul.
    hwp = scale * hw_raw + wpb_ref[0]

    # Shared raw broadcast score S[i, j] = r1_i + r2_j (pad cols pre-masked).
    s = scol_ref[0, 0] + srow_ref[0, 0]            # (Np,1)+(1,Np) -> (Np,Np)
    e = s + (kconst_ref[hd, 0] + kconst_ref[hd, 1])
    ep = scale2 * s + (kconst_ref[hd, 2] + kconst_ref[hd, 3])

    def _softmax(ev):
        ev = jnp.where(ev > 0, ev, alpha * ev)     # leaky relu
        m = jnp.max(ev, axis=1, keepdims=True)     # pre-mask row max (as in torch)
        ex = jnp.exp(ev - m) * adj
        ssum = jnp.sum(ex, axis=1, keepdims=True)
        ssum = jnp.where(ssum == 0.0, jnp.ones_like(ssum), ssum)
        return ex * pl.reciprocal(ssum, approx=True)   # EUP reciprocal (free slot)

    att = _softmax(e)
    attp = _softmax(ep)

    # LRP re-combination of the attention weights (forward value); exact f32
    # divide -- the eps-divide is ill-conditioned.
    attw_ref[0, 0] = attp * (att / (attp + 1e-6))

    h_prime = jnp.dot(att.astype(jnp.bfloat16), hw.astype(jnp.bfloat16),
                      preferred_element_type=jnp.float32)
    h_primep = jnp.dot(attp.astype(jnp.bfloat16), hwp.astype(jnp.bfloat16),
                       preferred_element_type=jnp.float32)
    contrib = (h_primep * (h_prime / (h_primep + 1e-6))) * inv_heads

    @pl.when(hd == 0)
    def _():
        out_ref[0] = contrib

    @pl.when(hd > 0)
    def _():
        out_ref[0] += contrib

    @pl.when(hd == num_heads - 1)
    def _():
        out_ref[0] = jnp.tanh(h + out_ref[0])


def gat_lrp_forward(h, adjacency, params, *, alpha=0.2, xai_lambda=0.2):
    """h: (B, N, 1, D), adjacency: (B, N, N). Returns (out, att_weights)."""
    B, N, _, D = h.shape
    H, D_out, D_in = params["W_w"].shape
    assert D_in == D and D_out == D, "residual add requires input_dim == output_dim"
    scale = 1.0 + xai_lambda

    h3 = h[:, :, 0, :].astype(jnp.float32)             # (B, N, D)
    adj = adjacency.astype(jnp.float32)

    Np = _pad_dim(N)
    Dp = _pad_dim(D)

    h_pad = jnp.zeros((B, Np, Dp), jnp.float32).at[:, :N, :D].set(h3)
    adj_pad = jnp.zeros((B, Np, Np), jnp.float32).at[:, :N, :N].set(adj)

    # Per-head weights, pre-transposed & bf16 for the MXU: W^T is (D_in, D_out).
    Ww = params["W_w"].astype(jnp.float32)             # (H, D_out, D_in)
    WwT = jnp.transpose(Ww, (0, 2, 1))                 # (H, D_in, D_out)
    w_heads = (jnp.zeros((H, Dp, Dp), jnp.float32)
               .at[:, :D, :D].set(WwT).astype(jnp.bfloat16))

    wb_pad = jnp.zeros((H, 1, Dp), jnp.float32).at[:, 0, :D].set(
        params["W_b"].astype(jnp.float32))
    wpb_pad = jnp.zeros((H, 1, Dp), jnp.float32).at[:, 0, :D].set(
        params["Wp_b"].astype(jnp.float32))

    # Rank-1 score projections, computed once in XLA (tiny) and fed pre-shaped:
    # r1 in column form (lane broadcast), r2 in row form (sublane broadcast).
    a1w = params["a1_w"][:, 0, :].astype(jnp.float32)  # (H, D_out)
    a2w = params["a2_w"][:, 0, :].astype(jnp.float32)
    c1 = jnp.einsum("hoi,ho->hi", Ww, a1w)             # (H, D_in) = W^T a1
    c2 = jnp.einsum("hoi,ho->hi", Ww, a2w)
    r1 = jnp.einsum("bnd,hd->bhn", h3, c1)             # (B, H, N)
    r2 = jnp.einsum("bnd,hd->bhn", h3, c2)

    # Pad-column guard: padded j-columns get -1e30 so the pre-mask row max can
    # never be dominated by padding.
    r1_pad = jnp.zeros((B, H, Np), jnp.float32).at[:, :, :N].set(r1)
    r2_pad = jnp.full((B, H, Np), -1e30, jnp.float32).at[:, :, :N].set(r2)
    s_col = r1_pad[:, :, :, None]                      # (B, H, Np, 1)
    s_row = r2_pad[:, :, None, :]                      # (B, H, 1, Np)

    # Scalar constants folded out of the a-projections (SMEM):
    #   a1  = r1 + (W_b . a1_w + a1_b)
    #   a1p = scale^2 * r1 + (scale * (Wp_b . a1_w) + a1p_b)
    k1 = jnp.sum(params["W_b"] * a1w, axis=-1) + params["a1_b"]
    k2 = jnp.sum(params["W_b"] * a2w, axis=-1) + params["a2_b"]
    k1p = scale * jnp.sum(params["Wp_b"] * a1w, axis=-1) + params["a1p_b"]
    k2p = scale * jnp.sum(params["Wp_b"] * a2w, axis=-1) + params["a2p_b"]
    kconst = jnp.stack([k1, k2, k1p, k2p], axis=1).astype(jnp.float32)   # (H, 4)

    # VMEM budget: double-buffered blocks + live attention intermediates.
    # Only set an explicit limit when the conservative 16 MiB scoped default
    # would not suffice; cap at 48 MiB (headroom on v7x's 64 MiB VMEM).
    f32b = 4
    block_bytes = (2 * Np * Dp + 2 * Np * Np + 2 * Np + 2 * Dp) * f32b + Dp * Dp * 2
    needed = 2 * block_bytes + (12 * Np * Np + 8 * Np * Dp) * f32b
    vmem_limit = int(min(needed, 48 << 20)) if needed > (16 << 20) else None

    kernel = functools.partial(_gat_lrp_kernel, alpha=alpha,
                               xai_lambda=xai_lambda, num_heads=H)

    out_pad, att_pad = pl.pallas_call(
        kernel,
        out_shape=(jax.ShapeDtypeStruct((B, Np, Dp), jnp.float32),
                   jax.ShapeDtypeStruct((B, H, Np, Np), jnp.float32)),
        grid_spec=pltpu.PrefetchScalarGridSpec(
            num_scalar_prefetch=0,
            grid=(B, H),                                   # batch outer, heads inner
            in_specs=[
                pl.BlockSpec((1, Np, Dp), lambda b, hd: (b, 0, 0)),       # h (held across heads)
                pl.BlockSpec((1, Np, Np), lambda b, hd: (b, 0, 0)),       # adjacency (held)
                pl.BlockSpec((1, Dp, Dp), lambda b, hd: (hd, 0, 0)),      # per-head W^T (bf16)
                pl.BlockSpec((1, 1, Dp), lambda b, hd: (hd, 0, 0)),       # W bias
                pl.BlockSpec((1, 1, Dp), lambda b, hd: (hd, 0, 0)),       # Wp bias
                pl.BlockSpec((1, 1, Np, 1), lambda b, hd: (b, hd, 0, 0)), # r1 (column form)
                pl.BlockSpec((1, 1, 1, Np), lambda b, hd: (b, hd, 0, 0)), # r2 (row form)
                pl.BlockSpec(memory_space=pltpu.MemorySpace.SMEM),        # scalar constants
            ],
            out_specs=[
                pl.BlockSpec((1, Np, Dp), lambda b, hd: (b, 0, 0)),        # out (accumulator)
                pl.BlockSpec((1, 1, Np, Np), lambda b, hd: (b, hd, 0, 0)), # per-head att weights
            ],
        ),
        compiler_params=pltpu.CompilerParams(
            dimension_semantics=("parallel", "arbitrary"),
            vmem_limit_bytes=vmem_limit),
    )(h_pad, adj_pad, w_heads, wb_pad, wpb_pad, s_col, s_row, kconst)

    out = out_pad[:, :N, :D]
    att_w = att_pad[:, :, :N, :N]
    return out[:, :, None, :], att_w


def init_params(key, input_dim, output_dim, num_heads):
    """Deterministic torch-nn.Linear-style init (uniform +-1/sqrt(fan_in))."""
    ks = jax.random.split(key, 9)
    kW = 1.0 / np.sqrt(input_dim)
    ka = 1.0 / np.sqrt(output_dim)

    def u(k, shape, lim):
        return jax.random.uniform(k, shape, jnp.float32, -lim, lim)

    return dict(
        W_w=u(ks[0], (num_heads, output_dim, input_dim), kW),
        W_b=u(ks[1], (num_heads, output_dim), kW),
        a1_w=u(ks[2], (num_heads, 1, output_dim), ka),
        a1_b=u(ks[3], (num_heads,), ka),
        a2_w=u(ks[4], (num_heads, 1, output_dim), ka),
        a2_b=u(ks[5], (num_heads,), ka),
        # Primed layers only get their *weights* overwritten in the torch code;
        # their biases remain independent randomly-initialized parameters.
        Wp_b=u(ks[6], (num_heads, output_dim), kW),
        a1p_b=u(ks[7], (num_heads,), ka),
        a2p_b=u(ks[8], (num_heads,), ka),
    )


def reference_forward(h, adjacency, params, alpha=0.2, xai_lambda=0.2):
    """Pure-JAX mirror of the torch forward (num_gat_iters=1, eval dropout)."""
    h3 = h[:, :, 0, :]
    scale = 1.0 + xai_lambda
    H = params["W_w"].shape[0]
    head_embeds, att_list = [], []
    for hd in range(H):
        Ww = params["W_w"][hd]
        hw = h3 @ Ww.T + params["W_b"][hd]
        hwp = h3 @ (Ww * scale).T + params["Wp_b"][hd]
        a1 = hw @ params["a1_w"][hd][0] + params["a1_b"][hd]
        a2 = hw @ params["a2_w"][hd][0] + params["a2_b"][hd]
        a1p = hwp @ (params["a1_w"][hd][0] * scale) + params["a1p_b"][hd]
        a2p = hwp @ (params["a2_w"][hd][0] * scale) + params["a2p_b"][hd]

        def attn(x1, x2):
            e = x1[:, :, None] + x2[:, None, :]
            e = jnp.where(e > 0, e, alpha * e)
            m = jnp.max(e, axis=2, keepdims=True)
            ex = jnp.exp(e - m) * adjacency
            s = jnp.sum(ex, axis=2, keepdims=True)
            s = jnp.where(s == 0.0, jnp.ones_like(s), s)
            return ex / s

        att = attn(a1, a2)
        attp = attn(a1p, a2p)
        hp = jnp.einsum('bij,bjd->bid', att, hw)
        hpp = jnp.einsum('bij,bjd->bid', attp, hwp)
        head_embeds.append(hpp * (hp / (hpp + 1e-6)))
        att_list.append(attp * (att / (attp + 1e-6)))
    out = jnp.tanh(h3 + jnp.mean(jnp.stack(head_embeds, axis=-1), axis=-1))
    return out[:, :, None, :], jnp.stack(att_list, axis=1)


if __name__ == "__main__":
    B, N, D, H = 2, 16, 32, 4  # batch, nodes, input_dim == output_dim, heads

    key = jax.random.PRNGKey(0)
    k1, k2, k3 = jax.random.split(key, 3)
    h = jax.random.normal(k1, (B, N, 1, D), jnp.float32)
    adj = (jax.random.uniform(k2, (B, N, N)) < 0.4).astype(jnp.float32)
    adj = jnp.maximum(adj, jnp.eye(N, dtype=jnp.float32)[None])  # self-loops
    params = init_params(k3, D, D, H)

    out, att_w = gat_lrp_forward(h, adj, params)
    out = jax.block_until_ready(out)
    att_w = jax.block_until_ready(att_w)

    assert out.shape == (B, N, 1, D)
    assert att_w.shape == (B, H, N, N)

    ref_out, ref_att = reference_forward(h, adj, params)
    # bf16 MXU operands (f32 accumulation) -> slightly looser tolerance than f32.
    np.testing.assert_allclose(np.asarray(out), np.asarray(ref_out),
                               rtol=2e-2, atol=2e-2)
    np.testing.assert_allclose(np.asarray(att_w), np.asarray(ref_att),
                               rtol=2e-2, atol=2e-2)

    print("KERNEL_OK")
</pallas_src>

<mosaic_0001>
module attributes {stable_mosaic.version = 11 : i64} {
  func.func @_gat_lrp_kernel(%arg0: i32, %arg1: i32, %arg2: memref<1x16x32xf32, #tpu.memory_space<vmem>>, %arg3: memref<1x16x16xf32, #tpu.memory_space<vmem>>, %arg4: memref<1x32x32xbf16, #tpu.memory_space<vmem>>, %arg5: memref<1x1x32xf32, #tpu.memory_space<vmem>>, %arg6: memref<1x1x32xf32, #tpu.memory_space<vmem>>, %arg7: memref<1x1x16x1xf32, #tpu.memory_space<vmem>>, %arg8: memref<1x1x1x16xf32, #tpu.memory_space<vmem>>, %arg9: memref<4x4xf32, #tpu.memory_space<smem>>, %arg10: memref<1x16x32xf32, #tpu.memory_space<vmem>>, %arg11: memref<1x1x16x16xf32, #tpu.memory_space<vmem>>) attributes {dimension_semantics = [#tpu.dimension_semantics<parallel>, #tpu.dimension_semantics<arbitrary>], iteration_bounds = array<i64: 2, 4>, scalar_prefetch = 0 : i64, scratch_operands = 0 : i64, tpu.core_type = #tpu.core_type<tc>, window_params = [{transform_indices = @transform_0, window_bounds = array<i64: 1, 16, 32>}, {transform_indices = @transform_1, window_bounds = array<i64: 1, 16, 16>}, {transform_indices = @transform_2, window_bounds = array<i64: 1, 32, 32>}, {transform_indices = @transform_3, window_bounds = array<i64: 1, 1, 32>}, {transform_indices = @transform_4, window_bounds = array<i64: 1, 1, 32>}, {transform_indices = @transform_5, window_bounds = array<i64: 1, 1, 16, 1>}, {transform_indices = @transform_6, window_bounds = array<i64: 1, 1, 1, 16>}, {transform_indices = @transform_7, window_bounds = array<i64: 4, 4>}, {transform_indices = @transform_8, window_bounds = array<i64: 1, 16, 32>}, {transform_indices = @transform_9, window_bounds = array<i64: 1, 1, 16, 16>}]} {
    %c0 = arith.constant 0 : index
    %c0_0 = arith.constant 0 : index
    %c0_1 = arith.constant 0 : index
    %0 = vector.load %arg2[%c0, %c0_0, %c0_1] : memref<1x16x32xf32, #tpu.memory_space<vmem>>, vector<1x16x32xf32>
    %1 = vector.shape_cast %0 : vector<1x16x32xf32> to vector<16x32xf32>
    %c0_2 = arith.constant 0 : index
    %c0_3 = arith.constant 0 : index
    %c0_4 = arith.constant 0 : index
    %2 = vector.load %arg3[%c0_2, %c0_3, %c0_4] : memref<1x16x16xf32, #tpu.memory_space<vmem>>, vector<1x16x16xf32>
    %3 = vector.shape_cast %2 : vector<1x16x16xf32> to vector<16x16xf32>
    %4 = arith.truncf %1 : vector<16x32xf32> to vector<16x32xbf16>
    %c0_5 = arith.constant 0 : index
    %c0_6 = arith.constant 0 : index
    %c0_7 = arith.constant 0 : index
    %5 = vector.load %arg4[%c0_5, %c0_6, %c0_7] : memref<1x32x32xbf16, #tpu.memory_space<vmem>>, vector<1x32x32xbf16>
    %6 = vector.shape_cast %5 : vector<1x32x32xbf16> to vector<32x32xbf16>
    %cst = arith.constant dense<0.000000e+00> : vector<16x32xf32>
    %7 = tpu.matmul %4, %6, %cst {dimension_numbers = #tpu.dot_dimension_numbers<[1], [0], [0], [1], [0, 0, 1, 1], [], []>} : vector<16x32xbf16>, vector<32x32xbf16>, vector<16x32xf32> -> vector<16x32xf32>
    %c0_8 = arith.constant 0 : index
    %c0_9 = arith.constant 0 : index
    %c0_10 = arith.constant 0 : index
    %8 = vector.load %arg5[%c0_8, %c0_9, %c0_10] : memref<1x1x32xf32, #tpu.memory_space<vmem>>, vector<1x1x32xf32>
    %9 = vector.shape_cast %8 : vector<1x1x32xf32> to vector<1x32xf32>
    %10 = vector.broadcast %9 : vector<1x32xf32> to vector<16x32xf32>
    %11 = arith.addf %7, %10 : vector<16x32xf32>
    %cst_11 = arith.constant 1.200000e+00 : f32
    %12 = vector.broadcast %cst_11 : f32 to vector<16x32xf32>
    %13 = arith.mulf %12, %7 : vector<16x32xf32>
    %c0_12 = arith.constant 0 : index
    %c0_13 = arith.constant 0 : index
    %c0_14 = arith.constant 0 : index
    %14 = vector.load %arg6[%c0_12, %c0_13, %c0_14] : memref<1x1x32xf32, #tpu.memory_space<vmem>>, vector<1x1x32xf32>
    %15 = vector.shape_cast %14 : vector<1x1x32xf32> to vector<1x32xf32>
    %16 = vector.broadcast %15 : vector<1x32xf32> to vector<16x32xf32>
    %17 = arith.addf %13, %16 : vector<16x32xf32>
    %c0_15 = arith.constant 0 : index
    %c0_16 = arith.constant 0 : index
    %c0_17 = arith.constant 0 : index
    %c0_18 = arith.constant 0 : index
    %18 = vector.load %arg7[%c0_15, %c0_16, %c0_17, %c0_18] : memref<1x1x16x1xf32, #tpu.memory_space<vmem>>, vector<1x1x16x1xf32>
    %19 = vector.shape_cast %18 : vector<1x1x16x1xf32> to vector<16x1xf32>
    %c0_19 = arith.constant 0 : index
    %c0_20 = arith.constant 0 : index
    %c0_21 = arith.constant 0 : index
    %c0_22 = arith.constant 0 : index
    %20 = vector.load %arg8[%c0_19, %c0_20, %c0_21, %c0_22] : memref<1x1x1x16xf32, #tpu.memory_space<vmem>>, vector<1x1x1x16xf32>
    %21 = vector.shape_cast %20 : vector<1x1x1x16xf32> to vector<1x16xf32>
    %22 = vector.broadcast %19 : vector<16x1xf32> to vector<16x16xf32>
    %23 = vector.broadcast %21 : vector<1x16xf32> to vector<16x16xf32>
    %24 = arith.addf %22, %23 : vector<16x16xf32>
    %25 = arith.index_cast %arg1 : i32 to index
    %c0_23 = arith.constant 0 : index
    %26 = memref.load %arg9[%25, %c0_23] : memref<4x4xf32, #tpu.memory_space<smem>>
    %27 = arith.index_cast %arg1 : i32 to index
    %c1 = arith.constant 1 : index
    %28 = memref.load %arg9[%27, %c1] : memref<4x4xf32, #tpu.memory_space<smem>>
    %29 = arith.addf %26, %28 : f32
    %30 = vector.broadcast %29 : f32 to vector<16x16xf32>
    %31 = arith.addf %24, %30 : vector<16x16xf32>
    %cst_24 = arith.constant 1.440000e+00 : f32
    %32 = vector.broadcast %cst_24 : f32 to vector<16x16xf32>
    %33 = arith.mulf %32, %24 : vector<16x16xf32>
    %34 = arith.index_cast %arg1 : i32 to index
    %c2 = arith.constant 2 : index
    %35 = memref.load %arg9[%34, %c2] : memref<4x4xf32, #tpu.memory_space<smem>>
    %36 = arith.index_cast %arg1 : i32 to index
    %c3 = arith.constant 3 : index
    %37 = memref.load %arg9[%36, %c3] : memref<4x4xf32, #tpu.memory_space<smem>>
    %38 = arith.addf %35, %37 : f32
    %39 = vector.broadcast %38 : f32 to vector<16x16xf32>
    %40 = arith.addf %33, %39 : vector<16x16xf32>
    %cst_25 = arith.constant 0.000000e+00 : f32
    %41 = vector.broadcast %cst_25 : f32 to vector<16x16xf32>
    %42 = arith.cmpf ogt, %31, %41 : vector<16x16xf32>
    %cst_26 = arith.constant 2.000000e-01 : f32
    %43 = vector.broadcast %cst_26 : f32 to vector<16x16xf32>
    %44 = arith.mulf %43, %31 : vector<16x16xf32>
    %45 = arith.select %42, %31, %44 : vector<16x16xi1>, vector<16x16xf32>
    %cst_27 = arith.constant dense<0xFF800000> : vector<16xf32>
    %46 = vector.multi_reduction <maximumf>, %45, %cst_27 [1] : vector<16x16xf32> to vector<16xf32>
    %47 = vector.shape_cast %46 : vector<16xf32> to vector<16x1xf32>
    %48 = vector.broadcast %47 : vector<16x1xf32> to vector<16x16xf32>
    %49 = arith.subf %45, %48 : vector<16x16xf32>
    %50 = math.exp %49 : vector<16x16xf32>
    %51 = arith.mulf %50, %3 : vector<16x16xf32>
    %cst_28 = arith.constant dense<0.000000e+00> : vector<16xf32>
    %52 = vector.multi_reduction <add>, %51, %cst_28 [1] : vector<16x16xf32> to vector<16xf32>
    %53 = vector.shape_cast %52 : vector<16xf32> to vector<16x1xf32>
    %cst_29 = arith.constant 0.000000e+00 : f32
    %54 = vector.broadcast %cst_29 : f32 to vector<16x1xf32>
    %55 = arith.cmpf oeq, %53, %54 : vector<16x1xf32>
    %cst_30 = arith.constant 1.000000e+00 : f32
    %56 = vector.broadcast %cst_30 : f32 to vector<16x1xf32>
    %57 = arith.select %55, %56, %53 : vector<16x1xi1>, vector<16x1xf32>
    %58 = tpu.reciprocal %57 {approx = true} : vector<16x1xf32> -> vector<16x1xf32>
    %59 = vector.broadcast %58 : vector<16x1xf32> to vector<16x16xf32>
    %60 = arith.mulf %51, %59 : vector<16x16xf32>
    %cst_31 = arith.constant 0.000000e+00 : f32
    %61 = vector.broadcast %cst_31 : f32 to vector<16x16xf32>
    %62 = arith.cmpf ogt, %40, %61 : vector<16x16xf32>
    %cst_32 = arith.constant 2.000000e-01 : f32
    %63 = vector.broadcast %cst_32 : f32 to vector<16x16xf32>
    %64 = arith.mulf %63, %40 : vector<16x16xf32>
    %65 = arith.select %62, %40, %64 : vector<16x16xi1>, vector<16x16xf32>
    %cst_33 = arith.constant dense<0xFF800000> : vector<16xf32>
    %66 = vector.multi_reduction <maximumf>, %65, %cst_33 [1] : vector<16x16xf32> to vector<16xf32>
    %67 = vector.shape_cast %66 : vector<16xf32> to vector<16x1xf32>
    %68 = vector.broadcast %67 : vector<16x1xf32> to vector<16x16xf32>
    %69 = arith.subf %65, %68 : vector<16x16xf32>
    %70 = math.exp %69 : vector<16x16xf32>
    %71 = arith.mulf %70, %3 : vector<16x16xf32>
    %cst_34 = arith.constant dense<0.000000e+00> : vector<16xf32>
    %72 = vector.multi_reduction <add>, %71, %cst_34 [1] : vector<16x16xf32> to vector<16xf32>
    %73 = vector.shape_cast %72 : vector<16xf32> to vector<16x1xf32>
    %cst_35 = arith.constant 0.000000e+00 : f32
    %74 = vector.broadcast %cst_35 : f32 to vector<16x1xf32>
    %75 = arith.cmpf oeq, %73, %74 : vector<16x1xf32>
    %cst_36 = arith.constant 1.000000e+00 : f32
    %76 = vector.broadcast %cst_36 : f32 to vector<16x1xf32>
    %77 = arith.select %75, %76, %73 : vector<16x1xi1>, vector<16x1xf32>
    %78 = tpu.reciprocal %77 {approx = true} : vector<16x1xf32> -> vector<16x1xf32>
    %79 = vector.broadcast %78 : vector<16x1xf32> to vector<16x16xf32>
    %80 = arith.mulf %71, %79 : vector<16x16xf32>
    %cst_37 = arith.constant 9.99999997E-7 : f32
    %81 = vector.broadcast %cst_37 : f32 to vector<16x16xf32>
    %82 = arith.addf %80, %81 : vector<16x16xf32>
    %83 = arith.divf %60, %82 : vector<16x16xf32>
    %84 = arith.mulf %80, %83 : vector<16x16xf32>
    %c0_38 = arith.constant 0 : index
    %c0_39 = arith.constant 0 : index
    %c0_40 = arith.constant 0 : index
    %c0_41 = arith.constant 0 : index
    %85 = vector.load %arg11[%c0_38, %c0_39, %c0_40, %c0_41] : memref<1x1x16x16xf32, #tpu.memory_space<vmem>>, vector<1x1x16x16xf32>
    %86 = vector.shape_cast %85 : vector<1x1x16x16xf32> to vector<16x16xf32>
    %87 = vector.shape_cast %84 : vector<16x16xf32> to vector<1x1x16x16xf32>
    tpu.vector_store %arg11[%c0_38, %c0_39, %c0_40, %c0_41], %87 {strides = array<i32>} : memref<1x1x16x16xf32, #tpu.memory_space<vmem>>, vector<1x1x16x16xf32>,
    %88 = arith.truncf %60 : vector<16x16xf32> to vector<16x16xbf16>
    %89 = arith.truncf %11 : vector<16x32xf32> to vector<16x32xbf16>
    %cst_42 = arith.constant dense<0.000000e+00> : vector<16x32xf32>
    %90 = tpu.matmul %88, %89, %cst_42 {dimension_numbers = #tpu.dot_dimension_numbers<[1], [0], [0], [1], [0, 0, 1, 1], [], []>} : vector<16x16xbf16>, vector<16x32xbf16>, vector<16x32xf32> -> vector<16x32xf32>
    %91 = arith.truncf %80 : vector<16x16xf32> to vector<16x16xbf16>
    %92 = arith.truncf %17 : vector<16x32xf32> to vector<16x32xbf16>
    %cst_43 = arith.constant dense<0.000000e+00> : vector<16x32xf32>
    %93 = tpu.matmul %91, %92, %cst_43 {dimension_numbers = #tpu.dot_dimension_numbers<[1], [0], [0], [1], [0, 0, 1, 1], [], []>} : vector<16x16xbf16>, vector<16x32xbf16>, vector<16x32xf32> -> vector<16x32xf32>
    %cst_44 = arith.constant 9.99999997E-7 : f32
    %94 = vector.broadcast %cst_44 : f32 to vector<16x32xf32>
    %95 = arith.addf %93, %94 : vector<16x32xf32>
    %96 = arith.divf %90, %95 : vector<16x32xf32>
    %97 = arith.mulf %93, %96 : vector<16x32xf32>
    %cst_45 = arith.constant 2.500000e-01 : f32
    %98 = vector.broadcast %cst_45 : f32 to vector<16x32xf32>
    %99 = arith.mulf %97, %98 : vector<16x32xf32>
    %c0_i32 = arith.constant 0 : i32
    %100 = arith.cmpi eq, %arg1, %c0_i32 : i32
    %101 = arith.extui %100 : i1 to i32
    %c0_i32_46 = arith.constant 0 : i32
    %102 = arith.cmpi ne, %101, %c0_i32_46 : i32
    scf.if %102 {
      %c0_50 = arith.constant 0 : index
      %c0_51 = arith.constant 0 : index
      %c0_52 = arith.constant 0 : index
      %109 = vector.load %arg10[%c0_50, %c0_51, %c0_52] : memref<1x16x32xf32, #tpu.memory_space<vmem>>, vector<1x16x32xf32>
      %110 = vector.shape_cast %109 : vector<1x16x32xf32> to vector<16x32xf32>
      %111 = vector.shape_cast %99 : vector<16x32xf32> to vector<1x16x32xf32>
      tpu.vector_store %arg10[%c0_50, %c0_51, %c0_52], %111 {strides = array<i32>} : memref<1x16x32xf32, #tpu.memory_space<vmem>>, vector<1x16x32xf32>,
    } else {
    }
    %c0_i32_47 = arith.constant 0 : i32
    %103 = arith.cmpi sgt, %arg1, %c0_i32_47 : i32
    %104 = arith.extui %103 : i1 to i32
    %c0_i32_48 = arith.constant 0 : i32
    %105 = arith.cmpi ne, %104, %c0_i32_48 : i32
    scf.if %105 {
      %c0_50 = arith.constant 0 : index
      %c0_51 = arith.constant 0 : index
      %c0_52 = arith.constant 0 : index
      %109 = vector.load %arg10[%c0_50, %c0_51, %c0_52] : memref<1x16x32xf32, #tpu.memory_space<vmem>>, vector<1x16x32xf32>
      %110 = vector.shape_cast %109 : vector<1x16x32xf32> to vector<16x32xf32>
      %111 = arith.addf %110, %99 : vector<16x32xf32>
      %c0_53 = arith.constant 0 : index
      %c0_54 = arith.constant 0 : index
      %c0_55 = arith.constant 0 : index
      %112 = vector.load %arg10[%c0_53, %c0_54, %c0_55] : memref<1x16x32xf32, #tpu.memory_space<vmem>>, vector<1x16x32xf32>
      %113 = vector.shape_cast %112 : vector<1x16x32xf32> to vector<16x32xf32>
      %114 = vector.shape_cast %111 : vector<16x32xf32> to vector<1x16x32xf32>
      tpu.vector_store %arg10[%c0_53, %c0_54, %c0_55], %114 {strides = array<i32>} : memref<1x16x32xf32, #tpu.memory_space<vmem>>, vector<1x16x32xf32>,
    } else {
    }
    %c3_i32 = arith.constant 3 : i32
    %106 = arith.cmpi eq, %arg1, %c3_i32 : i32
    %107 = arith.extui %106 : i1 to i32
    %c0_i32_49 = arith.constant 0 : i32
    %108 = arith.cmpi ne, %107, %c0_i32_49 : i32
    scf.if %108 {
      %c0_50 = arith.constant 0 : index
      %c0_51 = arith.constant 0 : index
      %c0_52 = arith.constant 0 : index
      %109 = vector.load %arg10[%c0_50, %c0_51, %c0_52] : memref<1x16x32xf32, #tpu.memory_space<vmem>>, vector<1x16x32xf32>
      %110 = vector.shape_cast %109 : vector<1x16x32xf32> to vector<16x32xf32>
      %111 = arith.addf %1, %110 : vector<16x32xf32>
      %112 = math.tanh %111 : vector<16x32xf32>
      %c0_53 = arith.constant 0 : index
      %c0_54 = arith.constant 0 : index
      %c0_55 = arith.constant 0 : index
      %113 = vector.load %arg10[%c0_53, %c0_54, %c0_55] : memref<1x16x32xf32, #tpu.memory_space<vmem>>, vector<1x16x32xf32>
      %114 = vector.shape_cast %113 : vector<1x16x32xf32> to vector<16x32xf32>
      %115 = vector.shape_cast %112 : vector<16x32xf32> to vector<1x16x32xf32>
      tpu.vector_store %arg10[%c0_53, %c0_54, %c0_55], %115 {strides = array<i32>} : memref<1x16x32xf32, #tpu.memory_space<vmem>>, vector<1x16x32xf32>,
    } else {
    }
    return
  }
  func.func @transform_0(%arg0: i32, %arg1: i32) -> (i32, i32, i32) {
    %c0_i32 = arith.constant 0 : i32
    %c0_i32_0 = arith.constant 0 : i32
    %c0_i32_1 = arith.constant 0 : i32
    return %arg0, %c0_i32, %c0_i32_0 : i32, i32, i32
  }
  func.func @transform_1(%arg0: i32, %arg1: i32) -> (i32, i32, i32) {
    %c0_i32 = arith.constant 0 : i32
    %c0_i32_0 = arith.constant 0 : i32
    %c0_i32_1 = arith.constant 0 : i32
    return %arg0, %c0_i32, %c0_i32_0 : i32, i32, i32
  }
  func.func @transform_2(%arg0: i32, %arg1: i32) -> (i32, i32, i32) {
    %c0_i32 = arith.constant 0 : i32
    %c0_i32_0 = arith.constant 0 : i32
    %c0_i32_1 = arith.constant 0 : i32
    return %arg1, %c0_i32, %c0_i32_0 : i32, i32, i32
  }
  func.func @transform_3(%arg0: i32, %arg1: i32) -> (i32, i32, i32) {
    %c0_i32 = arith.constant 0 : i32
    %c0_i32_0 = arith.constant 0 : i32
    %c0_i32_1 = arith.constant 0 : i32
    return %arg1, %c0_i32, %c0_i32_0 : i32, i32, i32
  }
  func.func @transform_4(%arg0: i32, %arg1: i32) -> (i32, i32, i32) {
    %c0_i32 = arith.constant 0 : i32
    %c0_i32_0 = arith.constant 0 : i32
    %c0_i32_1 = arith.constant 0 : i32
    return %arg1, %c0_i32, %c0_i32_0 : i32, i32, i32
  }
  func.func @transform_5(%arg0: i32, %arg1: i32) -> (i32, i32, i32, i32) {
    %c0_i32 = arith.constant 0 : i32
    %c0_i32_0 = arith.constant 0 : i32
    %c0_i32_1 = arith.constant 0 : i32
    return %arg0, %arg1, %c0_i32, %c0_i32_0 : i32, i32, i32, i32
  }
  func.func @transform_6(%arg0: i32, %arg1: i32) -> (i32, i32, i32, i32) {
    %c0_i32 = arith.constant 0 : i32
    %c0_i32_0 = arith.constant 0 : i32
    %c0_i32_1 = arith.constant 0 : i32
    return %arg0, %arg1, %c0_i32, %c0_i32_0 : i32, i32, i32, i32
  }
  func.func @transform_7(%arg0: i32, %arg1: i32) -> (i32, i32) {
    %c0_i32 = arith.constant 0 : i32
    %c0_i32_0 = arith.constant 0 : i32
    %c0_i32_1 = arith.constant 0 : i32
    return %c0_i32, %c0_i32_0 : i32, i32
  }
  func.func @transform_8(%arg0: i32, %arg1: i32) -> (i32, i32, i32) {
    %c0_i32 = arith.constant 0 : i32
    %c0_i32_0 = arith.constant 0 : i32
    %c0_i32_1 = arith.constant 0 : i32
    return %arg0, %c0_i32, %c0_i32_0 : i32, i32, i32
  }
  func.func @transform_9(%arg0: i32, %arg1: i32) -> (i32, i32, i32, i32) {
    %c0_i32 = arith.constant 0 : i32
    %c0_i32_0 = arith.constant 0 : i32
    %c0_i32_1 = arith.constant 0 : i32
    return %arg0, %arg1, %c0_i32, %c0_i32_0 : i32, i32, i32, i32
  }
}

</mosaic_0001>

<bundles_post_ra>
// kernel: tpu_custom_call.1
= control target key start
LH: loop header
LB: loop body
LE: loop exit
PB: predicated region body
PF: predicated region fallthrough
CT: control target
= control target key end

     0   :  { %s2011_s0 = inlined_call_operand.vmem [shape: f32[2,16,32], index: 0, kind: input, shape index: {}]   ;;  %s2012_s1 = inlined_call_operand.vmem [shape: f32[2,16,16], index: 1, kind: input, shape index: {}]   ;;  %s2013_s2 = inlined_call_operand.vmem [shape: bf16[4,32,32], index: 2, kind: input, shape index: {}]   ;;  %s2014_s3 = inlined_call_operand.hbm [shape: f32[4,1,32], index: 3, kind: input, shape index: {}]   ;;  %s2015_s4 = inlined_call_operand.hbm [shape: f32[4,1,32], index: 4, kind: input, shape index: {}]   ;;  %s2016_s5 = inlined_call_operand.vmem [shape: f32[2,4,16,1], index: 5, kind: input, shape index: {}]   ;;  %s2017_s6 = inlined_call_operand.vmem [shape: f32[2,4,1,16], index: 6, kind: input, shape index: {}]   ;;  %s2018_s7 = inlined_call_operand.vmem [shape: f32[4,4], index: 7, kind: input, shape index: {}]   ;;  %s2019_s8 = inlined_call_operand.hbm [shape: f32[2,16,32], index: 8, kind: output, shape index: {0}]   ;;  %s2020_s9 = inlined_call_operand.hbm [shape: f32[2,4,16,16], index: 9, kind: output, shape index: {1}]  }
   0x1   :  { %2042 = sst [smem:[#allocation32_spill]] %s2011_s0 }
   0x2   :  { %2043 = sst [smem:[#allocation33_spill]] %s2012_s1 }
   0x3   :  { %2044 = sst [smem:[#allocation34_spill]] %s2013_s2 }
   0x4   :  { %2045 = sst [smem:[#allocation35_spill]] %s2014_s3 }
   0x5   :  { %2046 = sst [smem:[#allocation36_spill]] %s2015_s4 }
   0x6   :  { %2047 = sst [smem:[#allocation37_spill]] %s2016_s5 }
   0x7   :  { %2048 = sst [smem:[#allocation38_spill]] %s2017_s6 }
   0x8   :  { %2049 = sst [smem:[#allocation39_spill]] %s2018_s7 }
   0x9   :  { %2050 = sst [smem:[#allocation40_spill]] %s2019_s8 }
   0xa   :  { %2051 = sst [smem:[#allocation41_spill]] %s2020_s9 }
   0xb   :  { %15 = vsyncpa [#allocation3], 0 }
   0xc   :  { %17 = vsyncpa [#allocation3 + $0x1], 0 }
   0xd   :  { %18 = vsyncpa [#allocation7], 0 }
   0xe   :  { %20 = vsyncpa [#allocation7 + $0x1], 0 }
   0xf   :  { %21 = vsyncpa [#allocation5], 0 }
  0x10   :  { %22 = vsyncpa [#allocation4], 0 }
  0x11   :  { %24 = vsyncpa [#allocation4 + $0x1], 0 }
  0x12   :  { %25 = vsyncpa [#allocation11], 0 }
  0x13   :  { %27 = vsyncpa [#allocation11 + $0x1], 0  ;;  %s1646_s30 = smov 0   ;;  %s1648_s10 = smov 0  }
  0x14   :  { %s1650_s11 = smov 0   ;;  %s1652_s12 = smov 0  }
  0x15   :  { %s1654_s13 = smov 0   ;;  %s1656_s14 = smov 0  }
  0x16   :  { %s1658_s15 = smov 0   ;;  %s1660_s16 = smov 0  }
  0x17   :  { %s1662_s17 = smov 0   ;;  %s1664_s18 = smov 0  }
  0x18   :  { %s1666_s19 = smov 0   ;;  %s1668_s20 = smov 0  }
  0x19   :  { %s1670_s21 = smov 0   ;;  %s1672_s22 = smov 0  }
  0x1a LB: > { %2052 = sst [smem:[#allocation17_spill]] %s1538_s30  ;;  %s1098_s23 = sadd.s32 4294967295, %s1590_s22   ;;  %s1590_s22 = sphi %s1672_s22, %s33_s22   ;;  %s1586_s21 = sphi %s1670_s21, %s2113_s21   ;;  %s1582_s20 = sphi %s1668_s20, %s2121_s20   ;;  %s1578_s19 = sphi %s1666_s19, %s2111_s19   ;;  %s1574_s18 = sphi %s1664_s18, %s2120_s18   ;;  %s1570_s17 = sphi %s1662_s17, %s2109_s17   ;;  %s1566_s16 = sphi %s1660_s16, %s2119_s16   ;;  %s1562_s15 = sphi %s1658_s15, %s2118_s15   ;;  %s1558_s14 = sphi %s1656_s14, %s2117_s14   ;;  %s1554_s13 = sphi %s1654_s13, %s2116_s13   ;;  %s1550_s12 = sphi %s1652_s12, %s2107_s12   ;;  %s1546_s11 = sphi %s1650_s11, %s2115_s11   ;;  %s1542_s10 = sphi %s1648_s10, %s2114_s10   ;;  %s1538_s30 = sphi %s1646_s30, %s2106_s30  }
  0x1b   : > { %2053 = sst [smem:[#allocation18_spill]] %s1542_s10  ;;  %s1099_s24 = sadd.s32 4294967294, %s1590_s22  }
  0x1c   : > { %2054 = sst [smem:[#allocation19_spill]] %s1550_s12  ;;  %p143_p0 = scmp.ne.s32.totalorder %s1566_s16, %s1562_s15 }
  0x1d   : > { %2055 = sst [smem:[#allocation20_spill]] %s1554_s13  ;;  %p1717_p1 = scmp.eq.s32.totalorder %s1098_s23, 0 }
  0x1e   : > { %2056 = sst [smem:[#allocation21_spill]] %s1570_s17  ;;  %p269_p2 = scmp.ne.s32.totalorder %s1558_s14, %s1554_s13 }
  0x1f   : > { %2057 = sst [smem:[#allocation22_spill]] %s1574_s18  ;;  %p1726_p3 = por %p1717_p1, %p143_p0 }
  0x20   : > { %2058 = sst [smem:[#allocation23_spill]] %s1582_s20  ;;  %p270_p4 = scmp.eq.s32.totalorder %s1098_s23, 7 }
  0x21   : > { %2059 = sst [smem:[#allocation24_spill]] %s1586_s21  ;;  %p275_p5 = scmp.ne.s32.totalorder %s1554_s13, %s1550_s12 }
  0x22   : > { %p276_p6 = scmp.eq.s32.totalorder %s1099_s24, 7  ;;  %p1732_p7 = por %p270_p4, %p269_p2 }
  0x23   : > { %p297_p9 = scmp.ne.s32.totalorder %s1546_s11, %s1542_s10  ;;  %p303_p10 = scmp.ne.s32.totalorder %s1542_s10, %s1538_s30 }
  0x24   : > { %s2062_s28 = scalar_select %p1732_p7, 1, 0 }
  0x25   : > { %p1737_p8 = por %p276_p6, %p275_p5  ;;  %p1100_p11 = scmp.ge.s32.totalorder %s1590_s22, 1 }
  0x26   : > { %2063 = sst [smem:[#allocation25_spill]] %s2062_s28  ;;  %p1746_p12 = por %p297_p9, %p270_p4 }
  0x27   : > { %s2064_s15 = scalar_select %p1737_p8, 1, 0 }
  0x28   : > { %s2066_s23 = scalar_select %p1746_p12, 1, 0 }
  0x29   : > { %2065 = sst [smem:[#allocation26_spill]] %s2064_s15  ;;  %p311_p13 = scmp.lt.s32.totalorder %s1590_s22, 9 }
  0x2a   : > { %2067 = sst [smem:[#allocation27_spill]] %s2066_s23  ;;  %p1751_p0 = por %p303_p10, %p276_p6 }
  0x2b   : > { %p1755_p2 = pnand %p1100_p11, %p311_p13  ;;  %s2071_s7 = sld [smem:[#allocation39_spill]] }
  0x2c   : > { %s2068_s24 = scalar_select %p1751_p0, 1, 0 }
  0x2d   : > { %p1159_p4 = pneg %p1755_p2  ;;  %s1592_s12 = smov [#allocation8]  }
  0x2e   : > { %2069 = sst [smem:[#allocation28_spill]] %s2068_s24  ;;  %s42_s24 = sadd.s32 1, %s1582_s20 }
  0x2f   : > { %p1160_p5 = pnand %p1159_p4, %p1717_p1  ;;  %s45_s9 = sadd.s32 1, %s1586_s21 }
  0x30   : > { %p43_p6 = scmp.ge.s32.totalorder %s42_s24, 4  ;;  %s130_s23 = sadd.s32 1, %s1570_s17 }
  0x31   : > { %s323_s15 = sshll.u32 %s2071_s7, 4  ;;  %p137_p9 = scmp.ne.s32.totalorder %s1570_s17, %s1566_s16  ;;  %s324_s15 = int_to_ptr.vmem [resolvable:$true] %s323_s15 }
  0x32   : > { %1162 = dma.vmem_to_smem (!%p1160_p5), %s324_s15, 64, %s1592_s12, [#allocation5]  }
  0x33   : > { %p138_p10 = scmp.eq.s32.totalorder %s1590_s22, 0  ;;  %s2123_s24 = smov (%p43_p6, %s42_s24), 0 }
  0x34   : > { %2072 = sst [smem:[#allocation29_spill]] %s2123_s24  ;;  %s2125_s9 = smov (!%p43_p6, %s45_s9), %s1586_s21 }
  0x35   : > { %s127_s30 = ssub.s32 %s1582_s20, %s2123_s24  ;;  %p1777_p11 = por %p138_p10, %p137_p9 }
  0x36   : > { %p47_p13 = scmp.ge.s32.totalorder %s2125_s9, 2  ;;  %p128_p4 = scmp.eq.s32.totalorder %s127_s30, 0 }
  0x37   : > { %p1178_p5 = scmp.lt.s32.totalorder %s1590_s22, 8  ;;  %s358_s26 = sand.u32 1, %s1570_s17  }
  0x38   : > { %s2127_s9 = smov (%p47_p13, %s2125_s9), 0  ;;  %s2076_s24 = sadd.s32 1, %s1558_s14 }
  0x39   : > { %2074 = sst [smem:[#allocation30_spill]] %s2127_s9  ;;  %s256_s7 = ssub.s32 %s1586_s21, %s2127_s9 }
  0x3a   : > { %s1786_s15 = scalar_select %p128_p4, %s1570_s17, %s130_s23  }
  0x3b   : > { %p257_p0 = scmp.eq.s32.totalorder %s256_s7, 0  ;;  %s284_s8 = sor.u32 %s256_s7, %s127_s30 }
  0x3c   : > { %2075 = sst [smem:[#allocation31_spill]] %s1786_s15  ;;  %p285_p6 = scmp.eq.s32.totalorder %s284_s8, 0 }
  0x3d   : > { %s1793_s28 = scalar_select %p257_p0, %s1558_s14, %s2076_s24  }
  0x3e   : > { %s2077_s10 = sadd.s32 1, %s1546_s11  ;;  %s2078_s3 = sld [smem:[#allocation35_spill]] }
  0x3f   : > { %s1798_s1 = scalar_select %p285_p6, %s1546_s11, %s2077_s10  }
  0x40   : > { %s361_s6 = scalar_lea.vmem [#allocation2], %s358_s26  ;;  %p1164_p9 = pnand %p1178_p5, %p1777_p11 }
  0x41   : > { %s368_s13 = sshll.u32 %s361_s6, 4  ;;  %s2079_s4 = sld [smem:[#allocation36_spill]]  ;;  %s369_s13 = int_to_ptr.vmem [resolvable:$true] %s368_s13 }
  0x42   : > { %s359_s24 = scalar_lea.sflag [#allocation3], %s358_s26  ;;  %s378_s30 = scalar_lea.vmem [#allocation6], %s358_s26 }
  0x43   : > { %s385_s9 = sshll.u32 %s378_s30, 4  ;;  %s376_s0 = scalar_lea.sflag [#allocation7], %s358_s26  ;;  %s386_s9 = int_to_ptr.vmem [resolvable:$true] %s385_s9 }
  0x44   : > { %s364_s5 = scalar_lea.hbm %s2078_s3, %s1582_s20  ;;  %s1815_s2 = sand.u32 (!%p1755_p2), 1, %s1566_s16  }
  0x45   : > { %s366_s18 = sshll.u32 %s364_s5, 4  ;;  %416 = sbr.rel (%p1755_p2) target bundleno = 739 (0x2e3), region = 52  ;;  %s367_s18 = int_to_ptr.hbm [resolvable:$true] %s366_s18 }
  0x46   : > { %1166 = dma.hbm_to_vmem [thread:$0]  (!%p1164_p9), %s367_s18, 16, %s369_s13, %s359_s24  }
  0x47   : > { %s381_s23 = scalar_lea.hbm %s2079_s4, %s1582_s20  ;;  %s419_s5 = scalar_lea.sflag (!%p1755_p2), [#allocation3], %s1815_s2 }
  0x48   : > { %s383_s10 = sshll.u32 %s381_s23, 4  ;;  %s384_s10 = int_to_ptr.hbm [resolvable:$true] %s383_s10 }
  0x49   : > { %1169 = dma.hbm_to_vmem [thread:$0]  (!%p1164_p9), %s384_s10, 16, %s386_s9, %s376_s0  }
  0x4a   : > { %1517 = dma.done.wait (%p1726_p3), %s419_s5, 16  }
  0x4b   : > { %1519 = vsyncadd (%p1726_p3), %s419_s5, 4294967280  ;;  %s428_s9 = scalar_lea.sflag [#allocation7], %s1815_s2 }
  0x4c   : > { %1521 = dma.done.wait (%p1726_p3), %s428_s9, 16  }
  0x4d   : > { %1523 = vsyncadd (%p1726_p3), %s428_s9, 4294967280 }
  0x4e   : > { %1525 = dma.done.wait (%p1717_p1), [#allocation5], 64  }
  0x4f   : > { %1527 = vsyncadd (%p1717_p1), [#allocation5], 4294967232 }
  0x50   : > { %441 = sfence }
  0x51   : > { %s2080_s18 = sld [smem:[#allocation22_spill]]  ;;  %p511_p0 = scmp.lt.s32.totalorder %s1578_s19, 1  ;;  %v1593_v0 = vmov 0   ;;  %vm638_vm1 = vcmask 130048   ;;  %vm564_vm5 = vcmask 261120  }
  0x52   : > { %s2081_s29 = sld [smem:[#allocation20_spill]]  ;;  %1297 = vset.pattern.permute.xlu0 %v1593_v0 }
  0x53   : > { %s1836_s12 = scalar_select %p511_p0, %s1578_s19, 1 }
  0x54   : > { %s2082_s30 = sld [smem:[#allocation38_spill]] }
  0x55   : > { %s1114_s26 = sshll.u32 %s1836_s12, 3  ;;  %s1116_s25 = sshll.u32 %s1836_s12, 2 }
  0x56   : > { %s2083_s6 = sld [smem:[#allocation37_spill]] }
  0x57   : > { %p521_p2 = scmp.lt.s32.totalorder %s2080_s18, 3  ;;  %s2084_s15 = sld [smem:[#allocation34_spill]] }
  0x58   : > { %s501_s4 = sand.u32 1, %s2081_s29   ;;  %p1129_p1 = scmp.ne.s32.totalorder %s2080_s18, 0 }
  0x59   : > { %s522_s27 = scalar_select %p521_p2, %s2080_s18, 3 }
  0x5a   : > { %s1850_s21 = sshll.u32 %s501_s4, 4 }
  0x5b   : > { %s1113_s7 = sshll.u32 %s522_s27, 1  ;;  %s540_s8 = sadd.s32 %s1116_s25, %s522_s27 }
  0x5c   : > { %s532_s23 = sadd.s32 %s1114_s26, %s1113_s7  ;;  %s541_s0 = scalar_lea.vmem %s2082_s30, %s540_s8 }
  0x5d   : > { %s1115_s5 = sshll.u32 %s532_s23, 3  ;;  %s1143_s20 = sshll.u32 %s522_s27, 4  ;;  %v1298_v5 = vld [vmem:[%s541_s0] ss:$0 sm:$0xff] }
  0x5e   : > { %s534_s3 = scalar_lea.vmem %s2083_s6, %s1115_s5  ;;  %s1126_s25 = sshll.u32 %s2080_s18, 7 }
  0x5f   : > { %v596_v1 = vld [vmem:[%s534_s3] sm:$0xff]  ;;  %v597_v2 = vld [vmem:[%s534_s3 + $0x8] sm:$0xff]  ;;  %s525_s24 = scalar_lea.vmem %s2084_s15, %s1143_s20  ;;  %s616_s8 = sadd.s32 1, %s1126_s25 }
  0x60   : > { %601 = vperm.xlu0 %1297, %v596_v1   ;;  %s624_s23 = sadd.s32 2, %s1126_s25  ;;  %s615_s10 = sld [smem:[#allocation8 + %s1126_s25]]  ;;  %v1145_v3 = vld [vmem:[%s525_s24 + $0x8] sm:$0xff]  ;;  %v1144_v4 = vld [vmem:[%s525_s24] sm:$0xff] }
  0x61   : > { %s626_s30 = sadd.s32 3, %s1126_s25  ;;  %s617_s6 = sld [smem:[#allocation8 + %s616_s8]]  ;;  %574 = vmatpush.bf16.msra.mxu0 %v1145_v3 }
  0x62   : > { %s625_s13 = sld [smem:[#allocation8 + %s624_s23]]  ;;  %s1141_s20 = sshll.u32 %s1836_s12, 4 }
  0x63   : > { %s627_s3 = sld [smem:[#allocation8 + %s626_s30]]  ;;  %s2087_s24 = scalar_lea.vmem [#allocation2], %s1815_s2 }
  0x64   : > { %s2085_s0 = sld [smem:[#allocation32_spill]]  ;;  %v1299_v60 = vld [vmem:[%s2087_s24] ss:$0 sm:$0xff]  ;;  %s2088_s8 = scalar_lea.vmem [#allocation6], %s1815_s2 }
  0x65   : > { %575 = vmatpush.bf16.msra.mxu0 %v1144_v4  ;;  %s2086_s26 = sld [smem:[#allocation33_spill]] }
  0x66   : > { %s2089_s2 = sld [smem:[#allocation18_spill]] }
  0x67   : > { %s618_s29 = sadd.f32 %s617_s6, %s615_s10  ;;  %s1898_s6 = scalar_lea.vmem [#allocation9], %s1850_s21 }
  0x68   : > { %606 = vperm.xlu0 %1297, %v597_v2   ;;  %v1300_v2 = vld [vmem:[%s2088_s8] ss:$0 sm:$0xff] }
  0x69   : > { %s628_s5 = sadd.f32 %s627_s3, %s625_s13  ;;  %v619_v6 = vstv %s618_s29 }
  0x6a   : > { %s515_s9 = scalar_lea.vmem %s2085_s0, %s1141_s20 }
  0x6b   : > { %v629_v9 = vstv %s628_s5  ;;  %v1864_v30 = vld [vmem:[%s515_s9] sm:$0xff]  ;;  %v1866_v31 = vld [vmem:[%s515_s9 + $0x8] sm:$0xff]  ;;  %s520_s7 = scalar_lea.vmem %s2086_s26, %s1141_s20 }
  0x6c   : > { %v547_v32 = vpack.c.bf16 %v1866_v31, %v1864_v30  ;;  %v545_v40 = vld [vmem:[%s520_s7] sm:$0xff]  ;;  %v546_v53 = vld [vmem:[%s520_s7 + $0x8] sm:$0xff]  ;;  %s508_s23 = sand.u32 1, %s2089_s2  }
  0x6d   : > { %s1106_s10 = sshll.u32 %s508_s23, 4 }
  0x6e   : > { %1125 = vmatmul.msk.bf16.vlgmr.msra.gmra.mxu0 %vm564_vm5, %v547_v32  ;;  %s1891_s30 = scalar_lea.vmem [#allocation10], %s1106_s10 }
  0xd2   : > { %v602_v7 = vpop.permute.xlu0 %601 }
  0xd3   : > { %v612_v8 = vadd.f32 %v1298_v5, %v602_v7 }
  0xd5   : > { %v620_v10 = vadd.f32 %v619_v6, %v612_v8  ;;  %v622_v11 = vmul.f32 1.44, %v612_v8 }
  0xd7   : > { %v630_v12 = vadd.f32 %v629_v9, %v622_v11  ;;  %vm632_vm0 = vcmp.gt.f32.partialorder %v620_v10, 0.0  ;;  %v634_v13 = vmul.f32 0.2, %v620_v10 }
  0xd9   : > { %v636_v14 = vsel %vm632_vm0, %v620_v10, %v634_v13  ;;  %vm667_vm2 = vcmp.gt.f32.partialorder %v630_v12, 0.0  ;;  %v669_v15 = vmul.f32 0.2, %v630_v12 }
  0xda   : > { %v607_v16 = vpop.permute.xlu0 %606  ;;  %v639_v17 = vsel %vm638_vm1, %v636_v14, -inf }
  0xdb   : > { %v613_v18 = vadd.f32 %v1298_v5, %v607_v16  ;;  %640 = vmax.xlane.f32.xlu2 %v639_v17  ;;  %v671_v19 = vsel %vm667_vm2, %v630_v12, %v669_v15 }
  0xdc   : > { %v673_v20 = vsel %vm638_vm1, %v671_v19, -inf }
  0xdd   : > { %v621_v21 = vadd.f32 %v619_v6, %v613_v18  ;;  %v623_v22 = vmul.f32 1.44, %v613_v18  ;;  %674 = vmax.xlane.f32.xlu1 %v673_v20 }
  0xdf   : > { %v631_v23 = vadd.f32 %v629_v9, %v623_v22  ;;  %vm633_vm3 = vcmp.gt.f32.partialorder %v621_v21, 0.0  ;;  %v635_v24 = vmul.f32 0.2, %v621_v21 }
  0xe1   : > { %v637_v25 = vsel %vm633_vm3, %v621_v21, %v635_v24  ;;  %vm668_vm4 = vcmp.gt.f32.partialorder %v631_v23, 0.0  ;;  %v670_v26 = vmul.f32 0.2, %v631_v23 }
  0xe2   : > { %v642_v27 = vsel %vm638_vm1, %v637_v25, -inf }
  0xe3   : > { %643 = vmax.xlane.f32.xlu2 %v642_v27  ;;  %v672_v28 = vsel %vm668_vm4, %v631_v23, %v670_v26 }
  0xe4   : > { %v676_v29 = vsel %vm638_vm1, %v672_v28, -inf }
  0xe5   : > { %677 = vmax.xlane.f32.xlu1 %v676_v29 }
  0xeb   : > { %v577_v59 = vpop.f32.mrf.mxu0 }
  0xec   : > { %v586_v61 = vadd.f32 %v1299_v60, %v577_v59  ;;  %v588_v62 = vmul.f32 1.2, %v577_v59 }
  0xee   : > { %v594_v4 = vadd.f32 %v1300_v2, %v588_v62 }
  0xf3   : > { %v579_v63 = vpop.f32.mrf.mxu0 }
  0xf4   : > { %v587_v0 = vadd.f32 %v1299_v60, %v579_v63  ;;  %v589_v1 = vmul.f32 1.2, %v579_v63 }
  0xf6   : > { %v738_v3 = vpack.c.bf16 %v587_v0, %v586_v61  ;;  %v595_v5 = vadd.f32 %v1300_v2, %v589_v1 }
  0xf8   : > { %749 = vmatpush.bf16.msra.mxu1 %v738_v3  ;;  %v757_v6 = vpack.c.bf16 %v595_v5, %v594_v4 }
  0xfa   : > { %768 = vmatpush.bf16.msra.mxu2 %v757_v6 }
 0x14e   : > { %v641_v33 = vpop.xlane.xlu2 %640 }
 0x14f   : > { %v645_v34 = vsub.f32 %v636_v14, %v641_v33 }
 0x150   : > { %v675_v35 = vpop.xlane.xlu1 %674 }
 0x151   : > { %v647_v36 = vmul.f32 1.442695, %v645_v34  ;;  %v679_v37 = vsub.f32 %v671_v19, %v675_v35 }
 0x153   : > { %1301 = vpow2.f32 %v647_v36  ;;  %v681_v38 = vmul.f32 1.442695, %v679_v37 }
 0x155   : > { %1303 = vpow2.f32 %v681_v38 }
 0x156   : > { %v644_v39 = vpop.xlane.xlu2 %643 }
 0x157   : > { %v646_v43 = vsub.f32 %v637_v25, %v644_v39 }
 0x158   : > { %v678_v41 = vpop.xlane.xlu1 %677 }
 0x159   : > { %v1302_v42 = vpop.eup %1301  ;;  %v680_v44 = vsub.f32 %v672_v28, %v678_v41  ;;  %v649_v50 = vmul.f32 1.442695, %v646_v43 }
 0x15a   : > { %v1874_v45 = vmul.f32 %v1302_v42, %v545_v40 }
 0x15b   : > { %v1304_v46 = vpop.eup %1303  ;;  %v683_v47 = vmul.f32 1.442695, %v680_v44 }
 0x15c   : > { %v653_v48 = vsel %vm638_vm1, %v1874_v45, 0.0  ;;  %v685_v49 = vmul.f32 %v1304_v46, %v545_v40 }
 0x15d   : > { %1305 = vpow2.f32 %v683_v47  ;;  %654 = vadd.xlane.f32.xlu2 %v653_v48 }
 0x15e   : > { %v687_v51 = vsel %vm638_vm1, %v685_v49, 0.0  ;;  %1307 = vpow2.f32 %v649_v50 }
 0x15f   : > { %688 = vadd.xlane.f32.xlu0 %v687_v51 }
 0x163   : > { %v1306_v52 = vpop.eup %1305 }
 0x164   : > { %v686_v54 = vmul.f32 %v1306_v52, %v546_v53  ;;  %v1308_v56 = vpop.eup %1307 }
 0x165   : > { %v652_v57 = vmul.f32 %v1308_v56, %v546_v53 }
 0x166   : > { %v690_v55 = vsel %vm638_vm1, %v686_v54, 0.0 }
 0x167   : > { %691 = vadd.xlane.f32.xlu1 %v690_v55  ;;  %v656_v58 = vsel %vm638_vm1, %v652_v57, 0.0 }
 0x16f   : > { %657 = vadd.xlane.f32.xlu1 %v656_v58 }
 0x1d0   : > { %v655_v9 = vpop.xlane.xlu2 %654 }
 0x1d1   : > { %vm659_vm8 = vcmp.eq.f32.partialorder %v655_v9, 0.0 }
 0x1d2   : > { %v689_v7 = vpop.xlane.xlu0 %688  ;;  %v661_v15 = vsel %vm659_vm8, 1.0, %v655_v9 }
 0x1d3   : > { %vm693_vm6 = vcmp.eq.f32.partialorder %v689_v7, 0.0 }
 0x1d4   : > { %v695_v8 = vsel %vm693_vm6, 1.0, %v689_v7 }
 0x1d5   : > { %1309 = vrcp.f32 %v695_v8 }
 0x1da   : > { %v692_v10 = vpop.xlane.xlu1 %691 }
 0x1db   : > { %v1310_v11 = vpop.eup %1309  ;;  %vm694_vm7 = vcmp.eq.f32.partialorder %v692_v10, 0.0 }
 0x1dc   : > { %v699_v12 = vmul.f32 %v1310_v11, %v685_v49  ;;  %v696_v13 = vsel %vm694_vm7, 1.0, %v692_v10 }
 0x1dd   : > { %1311 = vrcp.f32 %v696_v13 }
 0x1de   : > { %v701_v14 = vadd.f32 1e-06, %v699_v12 }
 0x1e0   : > { %1313 = vrcp.f32 %v701_v14  ;;  %v714_v26 = vand.u32 2147483648, %v701_v14  ;;  %v712_v29 = vand.u32 2147483647, %v701_v14  ;;  %vm708_vm11 = vweird.f32 %v701_v14 }
 0x1e1   : > { %1315 = vrcp.f32 %v661_v15 }
 0x1e2   : > { %v658_v16 = vpop.xlane.xlu1 %657  ;;  %v715_v36 = vor.u32 1.1754944e-38, %v714_v26  ;;  %vm713_vm13 = vcmp.eq.f32.partialorder %v712_v29, 8.507059e+37 }
 0x1e3   : > { %v1312_v17 = vpop.eup %1311  ;;  %vm660_vm9 = vcmp.eq.f32.partialorder %v658_v16, 0.0 }
 0x1e4   : > { %v662_v18 = vsel %vm660_vm9, 1.0, %v658_v16  ;;  %v700_v19 = vmul.f32 %v1312_v17, %v686_v54 }
 0x1e5   : > { %1317 = vrcp.f32 %v662_v18 }
 0x1e6   : > { %v1314_v20 = vpop.eup %1313  ;;  %v702_v21 = vadd.f32 1e-06, %v700_v19  ;;  %v756_v22 = vpack.c.bf16 %v700_v19, %v699_v12 }
 0x1e7   : > { %v704_v23 = vmul.f32 %v1314_v20, %v701_v14  ;;  %v1316_v24 = vpop.eup %1315  ;;  %vm709_vm10 = vweird.f32 %v1314_v20 }
 0x1e8   : > { %1319 = vrcp.f32 %v702_v21  ;;  %1128 = vmatmul.msk.bf16.vlgmr.msra.gmra.mxu2 %vm638_vm1, %v756_v22  ;;  %v665_v32 = vmul.f32 %v1316_v24, %v1874_v45  ;;  %vm710_vm12 = vmor %vm708_vm11, %vm709_vm10  ;;  %v729_v43 = vand.u32 2147483648, %v702_v21  ;;  %v727_v45 = vand.u32 2147483647, %v702_v21 }
 0x1e9   : > { %v705_v25 = vsub.f32 1.0, %v704_v23  ;;  %vm723_vm15 = vweird.f32 %v702_v21 }
 0x1ea   : > { %v730_v48 = vor.u32 1.1754944e-38, %v729_v43  ;;  %vm728_vm2 = vcmp.eq.f32.partialorder %v727_v45, 8.507059e+37 }
 0x1eb   : > { %v1318_v27 = vpop.eup %1317  ;;  %v706_v28 = vmul.f32 %v1314_v20, %v705_v25 }
 0x1ec   : > { %v666_v33 = vmul.f32 %v1318_v27, %v652_v57 }
 0x1ed   : > { %v707_v34 = vadd.f32 %v1314_v20, %v706_v28 }
 0x1ee   : > { %v1320_v35 = vpop.eup %1319  ;;  %v737_v37 = vpack.c.bf16 %v666_v33, %v665_v32 }
 0x1ef   : > { %v711_v38 = vsel %vm710_vm12, %v1314_v20, %v707_v34  ;;  %v719_v39 = vmul.f32 %v1320_v35, %v702_v21  ;;  %vm724_vm14 = vweird.f32 %v1320_v35 }
 0x1f0   : > { %v716_v40 = vsel %vm713_vm13, %v715_v36, %v711_v38  ;;  %1127 = vmatmul.msk.bf16.vlgmr.msra.gmra.mxu1 %vm638_vm1, %v737_v37  ;;  %vm725_vm0 = vmor %vm723_vm15, %vm724_vm14 }
 0x1f1   : > { %v717_v41 = vmul.f32 %v716_v40, %v665_v32  ;;  %v720_v42 = vsub.f32 1.0, %v719_v39 }
 0x1f3   : > { %v721_v44 = vmul.f32 %v1320_v35, %v720_v42  ;;  %v733_v46 = vmul.f32 %v717_v41, %v699_v12 }
 0x1f5   : > { %v722_v47 = vadd.f32 %v1320_v35, %v721_v44  ;;  %735 = vst.msk [vmem:[%s1891_s30] sm:$0xff] %vm638_vm1, %v733_v46 }
 0x1f7   : > { %v726_v49 = vsel %vm725_vm0, %v1320_v35, %v722_v47 }
 0x1f8   : > { %v731_v50 = vsel %vm728_vm2, %v730_v48, %v726_v49 }
 0x1f9   : > { %v732_v51 = vmul.f32 %v731_v50, %v666_v33 }
 0x1fb   : > { %v734_v52 = vmul.f32 %v732_v51, %v700_v19 }
 0x1fd   : > { %736 = vst.msk [vmem:[%s1891_s30 + $0x8] sm:$0xff] %vm638_vm1, %v734_v52 }
 0x26b   : > { %v770_v53 = vpop.f32.mrf.mxu2 }
 0x26c   : > { %v775_v54 = vadd.f32 1e-06, %v770_v53 }
 0x26d   : > { %v751_v1 = vpop.f32.mrf.mxu1 }
 0x26e   : > { %1321 = vrcp.f32 %v775_v54  ;;  %v788_v60 = vand.u32 2147483648, %v775_v54  ;;  %v786_v62 = vand.u32 2147483647, %v775_v54  ;;  %vm782_vm4 = vweird.f32 %v775_v54 }
 0x270   : > { %v789_v2 = vor.u32 1.1754944e-38, %v788_v60  ;;  %vm787_vm1 = vcmp.eq.f32.partialorder %v786_v62, 8.507059e+37 }
 0x273   : > { %v772_v55 = vpop.f32.mrf.mxu2 }
 0x274   : > { %v1322_v56 = vpop.eup %1321  ;;  %v776_v57 = vadd.f32 1e-06, %v772_v55 }
 0x275   : > { %v778_v58 = vmul.f32 %v1322_v56, %v775_v54  ;;  %vm783_vm3 = vweird.f32 %v1322_v56  ;;  %v753_v16 = vpop.f32.mrf.mxu1 }
 0x276   : > { %1323 = vrcp.f32 %v776_v57  ;;  %vm784_vm6 = vmor %vm782_vm4, %vm783_vm3  ;;  %v803_v8 = vand.u32 2147483648, %v776_v57  ;;  %v801_v11 = vand.u32 2147483647, %v776_v57  ;;  %vm797_vm8 = vweird.f32 %v776_v57 }
 0x277   : > { %v779_v59 = vsub.f32 1.0, %v778_v58 }
 0x278   : > { %v804_v14 = vor.u32 1.1754944e-38, %v803_v8  ;;  %vm802_vm10 = vcmp.eq.f32.partialorder %v801_v11, 8.507059e+37 }
 0x279   : > { %v780_v61 = vmul.f32 %v1322_v56, %v779_v59 }
 0x27b   : > { %v781_v63 = vadd.f32 %v1322_v56, %v780_v61 }
 0x27c   : > { %v1324_v0 = vpop.eup %1323 }
 0x27d   : > { %v785_v3 = vsel %vm784_vm6, %v1322_v56, %v781_v63  ;;  %v793_v4 = vmul.f32 %v1324_v0, %v776_v57  ;;  %vm798_vm7 = vweird.f32 %v1324_v0 }
 0x27e   : > { %v790_v5 = vsel %vm787_vm1, %v789_v2, %v785_v3  ;;  %vm799_vm9 = vmor %vm797_vm8, %vm798_vm7 }
 0x27f   : > { %v791_v6 = vmul.f32 %v790_v5, %v751_v1  ;;  %v794_v7 = vsub.f32 1.0, %v793_v4 }
 0x281   : > { %v807_v9 = vmul.f32 %v791_v6, %v770_v53  ;;  %v795_v10 = vmul.f32 %v1324_v0, %v794_v7 }
 0x283   : > { %v809_v12 = vmul.f32 0.25, %v807_v9  ;;  %v796_v13 = vadd.f32 %v1324_v0, %v795_v10 }
 0x285   : > { %v800_v15 = vsel %vm799_vm9, %v1324_v0, %v796_v13 }
 0x286   : > { %v805_v17 = vsel %vm802_vm10, %v804_v14, %v800_v15 }
 0x287   : > { %v806_v18 = vmul.f32 %v805_v17, %v753_v16  ;;  %814 = sbr.rel (%p1129_p1) target bundleno = 654 (0x28e), region = 68 }
 0x289   : > { %v808_v19 = vmul.f32 %v806_v18, %v772_v55 }
 0x28b   : > { %v810_v20 = vmul.f32 0.25, %v808_v19 }
 0x28c   : > { %815 = vst.msk [vmem:[%s1898_s6] sm:$0xff] %vm564_vm5, %v809_v12 }
 0x28d   : > { %816 = vst.msk [vmem:[%s1898_s6 + $0x8] sm:$0xff] %vm564_vm5, %v810_v20 }
 0x28e PF: > { %s2090_s13 = sld [smem:[#allocation22_spill]] }
 0x294   : > { %p1130_p3 = scmp.le.s32.totalorder %s2090_s13, 0 }
 0x296   : > { %820 = sbr.rel (%p1130_p3) target bundleno = 672 (0x2a0), region = 72 }
 0x29b   : > { %v821_v21 = vld [vmem:[%s1898_s6] sm:$0xff]  ;;  %v822_v22 = vld [vmem:[%s1898_s6 + $0x8] sm:$0xff] }
 0x29c   : > { %v823_v23 = vadd.f32 %v821_v21, %v809_v12  ;;  %v824_v24 = vadd.f32 %v822_v22, %v810_v20 }
 0x29e   : > { %825 = vst.msk [vmem:[%s1898_s6] sm:$0xff] %vm564_vm5, %v823_v23 }
 0x29f   : > { %826 = vst.msk [vmem:[%s1898_s6 + $0x8] sm:$0xff] %vm564_vm5, %v824_v24 }
 0x2a0 PF: > { %s2091_s21 = sld [smem:[#allocation22_spill]] }
 0x2a6   : > { %p1131_p10 = scmp.ne.s32.totalorder %s2091_s21, 3 }
 0x2a8   : > { %830 = sbr.rel (%p1131_p10) target bundleno = 697 (0x2b9), region = 76 }
 0x2ad   : > { %v831_v25 = vld [vmem:[%s1898_s6] sm:$0xff]  ;;  %v832_v26 = vld [vmem:[%s1898_s6 + $0x8] sm:$0xff] }
 0x2ae   : > { %v833_v27 = vadd.f32 %v831_v25, %v1864_v30  ;;  %v834_v28 = vadd.f32 %v832_v26, %v1866_v31 }
 0x2b0   : > { %1325 = vtanh.f32 %v833_v27 }
 0x2b1   : > { %1327 = vtanh.f32 %v834_v28 }
 0x2b6   : > { %v1326_v29 = vpop.eup %1325 }
 0x2b7   : > { %v1328_v32 = vpop.eup %1327  ;;  %837 = vst.msk [vmem:[%s1898_s6] sm:$0xff] %vm564_vm5, %v1326_v29 }
 0x2b8   : > { %838 = vst.msk [vmem:[%s1898_s6 + $0x8] sm:$0xff] %vm564_vm5, %v1328_v32 }
 0x2b9 PF: > { %s1146_s29 = sshll.u32 %s1578_s19, 4  ;;  %s2094_s15 = sld [smem:[#allocation40_spill]] }
 0x2ba   : > { %s857_s9 = sshll.u32 %s1898_s6, 4  ;;  %s840_s25 = scalar_lea.sflag [#allocation4], %s501_s4  ;;  %s858_s9 = int_to_ptr.vmem [resolvable:$true] %s857_s9 }
 0x2bf   : > { %s2095_s27 = smov %s2094_s15  ;;  %s856_s0 = scalar_lea.hbm %s2094_s15, %s1146_s29 }
 0x2c0   : > { %s859_s12 = sshll.u32 %s856_s0, 4  ;;  %s1424_s2 = scalar_lea.hbm %s2095_s27, 32  ;;  %s860_s12 = int_to_ptr.hbm [resolvable:$true] %s859_s12 }
 0x2c1   : > { %s1418_s26 = sshra.s32 %s860_s12, 4  ;;  %s1419_s26 = int_to_ptr.hbm [resolvable:$true] %s1418_s26 }
 0x2c2   : > { %s1420_s7 = scalar_lea.hbm %s1419_s26, 16  ;;  %p1425_p5 = scmp.lt.s32.totalorder %s1419_s26, %s2095_s27 }
 0x2c3   : > { %p1421_p11 = scmp.ne.s32.totalorder %s1419_s26, %s1420_s7  ;;  %p1426_p6 = scmp.lt.s32.totalorder %s1424_s2, %s1420_s7 }
 0x2c5   : > { %p1422_p13 = pnand %p1421_p11, %p1732_p7  ;;  %p1427_p9 = por %p1426_p6, %p1425_p5 }
 0x2c7   : > { %p1423_p4 = pneg %p1422_p13 }
 0x2c9   : > { %p1428_p0 = pnand %p1427_p9, %p1423_p4 }
 0x2cb   : > { %1431 = shalt.err (!%p1428_p0)
}
 0x2cc   : > { %s1594_s4 = smov 128   ;;  %s2096_s6 = sld [smem:[#allocation22_spill]] }
 0x2cd   : > { %s1595_s18 = smov 8   ;;  %s1137_s20 = sshll.u32 %s1578_s19, 3 }
 0x2ce   : > { %1155 = dma.vmem_to_hbm [thread:$0]  (%p1732_p7), %s858_s9, 256, %s860_s12, %s840_s25, %s1594_s4, %s1594_s4, %s1595_s18  }
 0x2cf   : > { %s876_s0 = sshll.u32 %s1891_s30, 4  ;;  %s2099_s8 = sld [smem:[#allocation41_spill]]  ;;  %s877_s0 = int_to_ptr.vmem [resolvable:$true] %s876_s0 }
 0x2d0   : > { %s845_s13 = scalar_lea.sflag [#allocation11], %s508_s23 }
 0x2d2   : > { %s1136_s5 = sshll.u32 %s2096_s6, 1 }
 0x2d3   : > { %s873_s15 = sadd.s32 %s1137_s20, %s1136_s5 }
 0x2d4   : > { %s1138_s24 = sshll.u32 %s873_s15, 3 }
 0x2d5   : > { %s875_s2 = scalar_lea.hbm %s2099_s8, %s1138_s24  ;;  %s1452_s30 = scalar_lea.hbm %s2099_s8, 128 }
 0x2d6   : > { %s878_s10 = sshll.u32 %s875_s2, 4  ;;  %s879_s10 = int_to_ptr.hbm [resolvable:$true] %s878_s10 }
 0x2d7   : > { %s1446_s27 = sshra.s32 %s879_s10, 4  ;;  %s1447_s27 = int_to_ptr.hbm [resolvable:$true] %s1446_s27 }
 0x2d8   : > { %s1448_s17 = scalar_lea.hbm %s1447_s27, 16  ;;  %p1453_p3 = scmp.lt.s32.totalorder %s1447_s27, %s2099_s8 }
 0x2d9   : > { %p1449_p2 = scmp.ne.s32.totalorder %s1447_s27, %s1448_s17  ;;  %p1454_p10 = scmp.lt.s32.totalorder %s1452_s30, %s1448_s17 }
 0x2db   : > { %p1450_p7 = pnand %p1449_p2, %p1746_p12  ;;  %p1455_p11 = por %p1454_p10, %p1453_p3 }
 0x2dd   : > { %p1451_p1 = pneg %p1450_p7 }
 0x2df   : > { %p1456_p13 = pnand %p1455_p11, %p1451_p1 }
 0x2e1   : > { %1459 = shalt.err (!%p1456_p13)
}
 0x2e2   : > { %1156 = dma.vmem_to_hbm [thread:$0]  (%p1746_p12), %s877_s0, 256, %s879_s10, %s845_s13, %s1594_s4, %s1594_s4, %s1595_s18  }
 0x2e3 PF: > { %s2100_s23 = sld [smem:[#allocation19_spill]]  ;;  %p1180_p4 = scmp.ge.s32.totalorder %s1590_s22, 2 }
 0x2e5   : > { %p1171_p5 = pnand %p1180_p4, %p1737_p8 }
 0x2e7   : > { %p1172_p6 = pneg %p1171_p5 }
 0x2e9   : > { %s893_s6 = sand.u32 1, %s2100_s23  }
 0x2ea   : > { %s894_s21 = scalar_lea.sflag [#allocation4], %s893_s6 }
 0x2eb   : > { %1529 = dma.done.wait (%p1172_p6), %s894_s21, 256  }
 0x2ec   : > { %1531 = vsyncadd (%p1172_p6), %s894_s21, 4294967040  ;;  %s2102_s27 = sld [smem:[#allocation17_spill]] }
 0x2ed   : > { %s2103_s17 = sld [smem:[#allocation28_spill]] }
 0x2f2   : > { %s903_s5 = sand.u32 1, %s2102_s27  }
 0x2f3   : > { %p2104_p9 = scmp.ne.s32.totalorder %s2103_s17, 0  ;;  %s904_s29 = scalar_lea.sflag [#allocation11], %s903_s5 }
 0x2f5   : > { %p1174_p0 = pnand %p1180_p4, %p2104_p9 }
 0x2f7   : > { %p1175_p2 = pneg %p1174_p0 }
 0x2f9   : > { %1533 = dma.done.wait (%p1175_p2), %s904_s29, 256  }
 0x2fa   : > { %1535 = vsyncadd (%p1175_p2), %s904_s29, 4294967040  ;;  %s33_s22 = sadd.s32 1, %s1590_s22   ;;  %s2106_s30 = sld [smem:[#allocation18_spill]] }
 0x2fb   : > { %p1964_p12 = scmp.ge.s32.totalorder %s33_s22, 10   ;;  %s2107_s12 = sld [smem:[#allocation20_spill]] }
 0x2fc   : > { %s2108_s18 = sld [smem:[#allocation21_spill]]  ;;  %s2114_s10 = smov %s1546_s11 }
 0x2fd   : > { %s2109_s17 = sld [smem:[#allocation31_spill]]  ;;  %s2115_s11 = smov %s1798_s1 }
 0x2fe   : > { %s2110_s20 = sld [smem:[#allocation23_spill]]  ;;  %s2116_s13 = smov %s1558_s14 }
 0x2ff   : > { %s2111_s19 = sld [smem:[#allocation24_spill]]  ;;  %s2117_s14 = smov %s1793_s28 }
 0x300   : > { %s2112_s0 = sld [smem:[#allocation29_spill]]  ;;  %s2118_s15 = smov %s1566_s16 }
 0x301   : > { %s2113_s21 = sld [smem:[#allocation30_spill]] }
 0x302   : > { %s2119_s16 = smov %s2108_s18  ;;  %32 = sbr.rel (!%p1964_p12) target bundleno = 26 (0x1a), region = 159 }
 0x304   : > { %s2120_s18 = smov %s2110_s20 }
 0x306   : > { %s2121_s20 = smov %s2112_s0 }
 0x307   :  { %910 = vsyncpa [#allocation3], 1 }
 0x308   :  { %912 = vsyncpa [#allocation3 + $0x1], 1 }
 0x309   :  { %913 = vsyncpa [#allocation7], 1 }
 0x30a   :  { %915 = vsyncpa [#allocation7 + $0x1], 1 }
 0x30b   :  { %916 = vsyncpa [#allocation4], 1 }
 0x30c   :  { %918 = vsyncpa [#allocation4 + $0x1], 1 }
 0x30d   :  { %919 = vsyncpa [#allocation11], 1 }
 0x30e   :  { %921 = vsyncpa [#allocation11 + $0x1], 1 }
 0x30f   :  { %922 = vsyncpa [#allocation5], 1 }
 0x310   :  { %924 = vsyncpa [#allocation5 + $0x1], 1 }

</bundles_post_ra>
